<compile_context>
chip_gen: v6e
topology: v6e:2x2x1
jax: 0.10.0
libtpu: 0.0.40
codegen_flags: <defaults>
</compile_context>

<pallas_src>
import functools

import jax
import jax.numpy as jnp
import numpy as np
from jax.experimental import pallas as pl
from jax.experimental.pallas import tpu as pltpu

TIME_WINDOW = 5   # matches `time_window = 5` in the PyTorch file
_LANES = 128


def _maxpool_rowblock_kernel(x_ref, o_ref, *, k, s, bh, w):
    """Pools `bh` output rows (for every plane held on lanes) per grid step.

    x_ref: (hp, wp, Pp)  whole padded input: H on the major axis, W on
                         sublanes, planes on lanes.
    o_ref: (bh, w, Pp)   block of pooled output rows.
    """
    i = pl.program_id(0)
    row_base = pl.multiple_of(i * (bh * s), bh * s)   # first input row of block

    for oh in range(bh):                              # small static unroll
        base = row_base + oh * s
        acc = None
        for ki in range(k):
            for kj in range(k):
                col = pl.ds(kj, w, stride=s) if s > 1 else pl.ds(kj, w)
                v = x_ref[base + ki, col, :]          # (w, Pp) sublane-strided load
                acc = v if acc is None else jnp.maximum(acc, v)
        o_ref[oh] = acc.astype(o_ref.dtype)           # lane-dense unmasked store


def pools_forward(x, kernel_size, stride, padding=0, dilation=1):
    """JAX/Pallas equivalent of Pools.forward.

    x: (time_window, N, C, H, W) array (same axis convention as the PyTorch module).
    returns: (time_window, N, C, h, w) float32 (torch.zeros default dtype).
    """
    t, n, c, H, W = x.shape
    assert t == TIME_WINDOW
    # nn.MaxPool2d in the original module is built without dilation.
    assert dilation == 1  # TODO(synk): dilation != 1 not supported (mirrors original module)

    k, s, p = kernel_size, stride, padding
    # Same output-size formula as the PyTorch module.
    h = int((H + 2 * p - dilation * (k - 1) - 1) / s + 1)
    w = int((W + 2 * p - dilation * (k - 1) - 1) / s + 1)

    P = t * n * c
    # Planes-on-lanes layout: (H, W, P). Wrapper transpose is layout plumbing.
    xl = jnp.transpose(x.reshape(P, H, W), (1, 2, 0))
    if p:
        # True -inf padding (matches nn.MaxPool2d); no matmuls so no NaN risk.
        xl = jnp.pad(xl, ((p, p), (p, p), (0, 0)), constant_values=-jnp.inf)
    Pp = ((P + _LANES - 1) // _LANES) * _LANES
    if Pp != P:
        xl = jnp.pad(xl, ((0, 0), (0, 0), (0, Pp - P)))   # pad lanes to 128 multiple
    hp, wp = H + 2 * p, W + 2 * p

    # >= 2 grid steps (marked "parallel") so both v7x TensorCores get work.
    G = 2 if (h >= 2 and h % 2 == 0) else 1
    bh = h // G

    kern = functools.partial(_maxpool_rowblock_kernel, k=k, s=s, bh=bh, w=w)

    out = pl.pallas_call(
        kern,
        out_shape=jax.ShapeDtypeStruct((h, w, Pp), jnp.float32),
        grid=(G,),
        in_specs=[pl.BlockSpec((hp, wp, Pp), lambda i: (0, 0, 0))],   # whole input, fetched once
        out_specs=pl.BlockSpec((bh, w, Pp), lambda i: (i, 0, 0)),
        compiler_params=pltpu.CompilerParams(
            dimension_semantics=("parallel",)),
    )(xl)

    out = out[:, :, :P]                                   # drop lane padding
    return jnp.transpose(out, (2, 0, 1)).reshape(t, n, c, h, w)


if __name__ == "__main__":
    key = jax.random.PRNGKey(0)
    T, N, C, H, W = TIME_WINDOW, 2, 4, 16, 16
    x = jax.random.normal(key, (T, N, C, H, W), dtype=jnp.float32)

    kernel_size, stride, padding = 2, 2, 0

    out = pools_forward(x, kernel_size, stride, padding)
    out = jax.block_until_ready(out)

    # Pure-JAX reference (same semantics as nn.MaxPool2d per timestep).
    ref = jax.lax.reduce_window(
        x.astype(jnp.float32), -jnp.inf, jax.lax.max,
        window_dimensions=(1, 1, 1, kernel_size, kernel_size),
        window_strides=(1, 1, 1, stride, stride),
        padding=((0, 0), (0, 0), (0, 0),
                 (padding, padding), (padding, padding)))

    assert out.shape == (T, N, C, 8, 8), out.shape
    np.testing.assert_allclose(np.asarray(out), np.asarray(ref),
                               rtol=1e-6, atol=1e-6)
    print("KERNEL_OK")
</pallas_src>

<mosaic_0001>
module attributes {stable_mosaic.version = 11 : i64} {
  func.func @_maxpool_rowblock_kernel(%arg0: i32, %arg1: memref<16x16x128xf32, #tpu.memory_space<vmem>>, %arg2: memref<4x8x128xf32, #tpu.memory_space<vmem>>) attributes {dimension_semantics = [#tpu.dimension_semantics<parallel>], iteration_bounds = array<i64: 2>, scalar_prefetch = 0 : i64, scratch_operands = 0 : i64, tpu.core_type = #tpu.core_type<tc>, window_params = [{pipeline_mode = #tpu.pipeline_mode<synchronous>, transform_indices = @transform_0, window_bounds = array<i64: 16, 16, 128>}, {transform_indices = @transform_1, window_bounds = array<i64: 4, 8, 128>}]} {
    %c8_i32 = arith.constant 8 : i32
    %0 = arith.muli %arg0, %c8_i32 : i32
    %1 = tpu.assume_multiple %0, 8 : i32
    %c0_i32 = arith.constant 0 : i32
    %2 = arith.addi %1, %c0_i32 : i32
    %c0_i32_0 = arith.constant 0 : i32
    %3 = arith.addi %2, %c0_i32_0 : i32
    %4 = arith.index_cast %3 : i32 to index
    %c0 = arith.constant 0 : index
    %c0_1 = arith.constant 0 : index
    %5 = tpu.strided_load %arg1[%4, %c0, %c0_1] {strides = array<i32: 1, 2, 1>} : memref<16x16x128xf32, #tpu.memory_space<vmem>>, vector<1x8x128xf32>
    %6 = vector.shape_cast %5 : vector<1x8x128xf32> to vector<8x128xf32>
    %c0_i32_2 = arith.constant 0 : i32
    %7 = arith.addi %2, %c0_i32_2 : i32
    %8 = arith.index_cast %7 : i32 to index
    %c1 = arith.constant 1 : index
    %c0_3 = arith.constant 0 : index
    %9 = tpu.strided_load %arg1[%8, %c1, %c0_3] {strides = array<i32: 1, 2, 1>} : memref<16x16x128xf32, #tpu.memory_space<vmem>>, vector<1x8x128xf32>
    %10 = vector.shape_cast %9 : vector<1x8x128xf32> to vector<8x128xf32>
    %11 = arith.maximumf %6, %10 : vector<8x128xf32>
    %c1_i32 = arith.constant 1 : i32
    %12 = arith.addi %2, %c1_i32 : i32
    %13 = arith.index_cast %12 : i32 to index
    %c0_4 = arith.constant 0 : index
    %c0_5 = arith.constant 0 : index
    %14 = tpu.strided_load %arg1[%13, %c0_4, %c0_5] {strides = array<i32: 1, 2, 1>} : memref<16x16x128xf32, #tpu.memory_space<vmem>>, vector<1x8x128xf32>
    %15 = vector.shape_cast %14 : vector<1x8x128xf32> to vector<8x128xf32>
    %16 = arith.maximumf %11, %15 : vector<8x128xf32>
    %c1_i32_6 = arith.constant 1 : i32
    %17 = arith.addi %2, %c1_i32_6 : i32
    %18 = arith.index_cast %17 : i32 to index
    %c1_7 = arith.constant 1 : index
    %c0_8 = arith.constant 0 : index
    %19 = tpu.strided_load %arg1[%18, %c1_7, %c0_8] {strides = array<i32: 1, 2, 1>} : memref<16x16x128xf32, #tpu.memory_space<vmem>>, vector<1x8x128xf32>
    %20 = vector.shape_cast %19 : vector<1x8x128xf32> to vector<8x128xf32>
    %21 = arith.maximumf %16, %20 : vector<8x128xf32>
    %c0_9 = arith.constant 0 : index
    %c0_10 = arith.constant 0 : index
    %c0_11 = arith.constant 0 : index
    %22 = vector.load %arg2[%c0_9, %c0_10, %c0_11] : memref<4x8x128xf32, #tpu.memory_space<vmem>>, vector<1x8x128xf32>
    %23 = vector.shape_cast %22 : vector<1x8x128xf32> to vector<8x128xf32>
    %24 = vector.shape_cast %21 : vector<8x128xf32> to vector<1x8x128xf32>
    tpu.vector_store %arg2[%c0_9, %c0_10, %c0_11], %24 {strides = array<i32>} : memref<4x8x128xf32, #tpu.memory_space<vmem>>, vector<1x8x128xf32>,
    %c2_i32 = arith.constant 2 : i32
    %25 = arith.addi %1, %c2_i32 : i32
    %c0_i32_12 = arith.constant 0 : i32
    %26 = arith.addi %25, %c0_i32_12 : i32
    %27 = arith.index_cast %26 : i32 to index
    %c0_13 = arith.constant 0 : index
    %c0_14 = arith.constant 0 : index
    %28 = tpu.strided_load %arg1[%27, %c0_13, %c0_14] {strides = array<i32: 1, 2, 1>} : memref<16x16x128xf32, #tpu.memory_space<vmem>>, vector<1x8x128xf32>
    %29 = vector.shape_cast %28 : vector<1x8x128xf32> to vector<8x128xf32>
    %c0_i32_15 = arith.constant 0 : i32
    %30 = arith.addi %25, %c0_i32_15 : i32
    %31 = arith.index_cast %30 : i32 to index
    %c1_16 = arith.constant 1 : index
    %c0_17 = arith.constant 0 : index
    %32 = tpu.strided_load %arg1[%31, %c1_16, %c0_17] {strides = array<i32: 1, 2, 1>} : memref<16x16x128xf32, #tpu.memory_space<vmem>>, vector<1x8x128xf32>
    %33 = vector.shape_cast %32 : vector<1x8x128xf32> to vector<8x128xf32>
    %34 = arith.maximumf %29, %33 : vector<8x128xf32>
    %c1_i32_18 = arith.constant 1 : i32
    %35 = arith.addi %25, %c1_i32_18 : i32
    %36 = arith.index_cast %35 : i32 to index
    %c0_19 = arith.constant 0 : index
    %c0_20 = arith.constant 0 : index
    %37 = tpu.strided_load %arg1[%36, %c0_19, %c0_20] {strides = array<i32: 1, 2, 1>} : memref<16x16x128xf32, #tpu.memory_space<vmem>>, vector<1x8x128xf32>
    %38 = vector.shape_cast %37 : vector<1x8x128xf32> to vector<8x128xf32>
    %39 = arith.maximumf %34, %38 : vector<8x128xf32>
    %c1_i32_21 = arith.constant 1 : i32
    %40 = arith.addi %25, %c1_i32_21 : i32
    %41 = arith.index_cast %40 : i32 to index
    %c1_22 = arith.constant 1 : index
    %c0_23 = arith.constant 0 : index
    %42 = tpu.strided_load %arg1[%41, %c1_22, %c0_23] {strides = array<i32: 1, 2, 1>} : memref<16x16x128xf32, #tpu.memory_space<vmem>>, vector<1x8x128xf32>
    %43 = vector.shape_cast %42 : vector<1x8x128xf32> to vector<8x128xf32>
    %44 = arith.maximumf %39, %43 : vector<8x128xf32>
    %c1_24 = arith.constant 1 : index
    %c0_25 = arith.constant 0 : index
    %c0_26 = arith.constant 0 : index
    %45 = vector.load %arg2[%c1_24, %c0_25, %c0_26] : memref<4x8x128xf32, #tpu.memory_space<vmem>>, vector<1x8x128xf32>
    %46 = vector.shape_cast %45 : vector<1x8x128xf32> to vector<8x128xf32>
    %47 = vector.shape_cast %44 : vector<8x128xf32> to vector<1x8x128xf32>
    tpu.vector_store %arg2[%c1_24, %c0_25, %c0_26], %47 {strides = array<i32>} : memref<4x8x128xf32, #tpu.memory_space<vmem>>, vector<1x8x128xf32>,
    %c4_i32 = arith.constant 4 : i32
    %48 = arith.addi %1, %c4_i32 : i32
    %c0_i32_27 = arith.constant 0 : i32
    %49 = arith.addi %48, %c0_i32_27 : i32
    %50 = arith.index_cast %49 : i32 to index
    %c0_28 = arith.constant 0 : index
    %c0_29 = arith.constant 0 : index
    %51 = tpu.strided_load %arg1[%50, %c0_28, %c0_29] {strides = array<i32: 1, 2, 1>} : memref<16x16x128xf32, #tpu.memory_space<vmem>>, vector<1x8x128xf32>
    %52 = vector.shape_cast %51 : vector<1x8x128xf32> to vector<8x128xf32>
    %c0_i32_30 = arith.constant 0 : i32
    %53 = arith.addi %48, %c0_i32_30 : i32
    %54 = arith.index_cast %53 : i32 to index
    %c1_31 = arith.constant 1 : index
    %c0_32 = arith.constant 0 : index
    %55 = tpu.strided_load %arg1[%54, %c1_31, %c0_32] {strides = array<i32: 1, 2, 1>} : memref<16x16x128xf32, #tpu.memory_space<vmem>>, vector<1x8x128xf32>
    %56 = vector.shape_cast %55 : vector<1x8x128xf32> to vector<8x128xf32>
    %57 = arith.maximumf %52, %56 : vector<8x128xf32>
    %c1_i32_33 = arith.constant 1 : i32
    %58 = arith.addi %48, %c1_i32_33 : i32
    %59 = arith.index_cast %58 : i32 to index
    %c0_34 = arith.constant 0 : index
    %c0_35 = arith.constant 0 : index
    %60 = tpu.strided_load %arg1[%59, %c0_34, %c0_35] {strides = array<i32: 1, 2, 1>} : memref<16x16x128xf32, #tpu.memory_space<vmem>>, vector<1x8x128xf32>
    %61 = vector.shape_cast %60 : vector<1x8x128xf32> to vector<8x128xf32>
    %62 = arith.maximumf %57, %61 : vector<8x128xf32>
    %c1_i32_36 = arith.constant 1 : i32
    %63 = arith.addi %48, %c1_i32_36 : i32
    %64 = arith.index_cast %63 : i32 to index
    %c1_37 = arith.constant 1 : index
    %c0_38 = arith.constant 0 : index
    %65 = tpu.strided_load %arg1[%64, %c1_37, %c0_38] {strides = array<i32: 1, 2, 1>} : memref<16x16x128xf32, #tpu.memory_space<vmem>>, vector<1x8x128xf32>
    %66 = vector.shape_cast %65 : vector<1x8x128xf32> to vector<8x128xf32>
    %67 = arith.maximumf %62, %66 : vector<8x128xf32>
    %c2 = arith.constant 2 : index
    %c0_39 = arith.constant 0 : index
    %c0_40 = arith.constant 0 : index
    %68 = vector.load %arg2[%c2, %c0_39, %c0_40] : memref<4x8x128xf32, #tpu.memory_space<vmem>>, vector<1x8x128xf32>
    %69 = vector.shape_cast %68 : vector<1x8x128xf32> to vector<8x128xf32>
    %70 = vector.shape_cast %67 : vector<8x128xf32> to vector<1x8x128xf32>
    tpu.vector_store %arg2[%c2, %c0_39, %c0_40], %70 {strides = array<i32>} : memref<4x8x128xf32, #tpu.memory_space<vmem>>, vector<1x8x128xf32>,
    %c6_i32 = arith.constant 6 : i32
    %71 = arith.addi %1, %c6_i32 : i32
    %c0_i32_41 = arith.constant 0 : i32
    %72 = arith.addi %71, %c0_i32_41 : i32
    %73 = arith.index_cast %72 : i32 to index
    %c0_42 = arith.constant 0 : index
    %c0_43 = arith.constant 0 : index
    %74 = tpu.strided_load %arg1[%73, %c0_42, %c0_43] {strides = array<i32: 1, 2, 1>} : memref<16x16x128xf32, #tpu.memory_space<vmem>>, vector<1x8x128xf32>
    %75 = vector.shape_cast %74 : vector<1x8x128xf32> to vector<8x128xf32>
    %c0_i32_44 = arith.constant 0 : i32
    %76 = arith.addi %71, %c0_i32_44 : i32
    %77 = arith.index_cast %76 : i32 to index
    %c1_45 = arith.constant 1 : index
    %c0_46 = arith.constant 0 : index
    %78 = tpu.strided_load %arg1[%77, %c1_45, %c0_46] {strides = array<i32: 1, 2, 1>} : memref<16x16x128xf32, #tpu.memory_space<vmem>>, vector<1x8x128xf32>
    %79 = vector.shape_cast %78 : vector<1x8x128xf32> to vector<8x128xf32>
    %80 = arith.maximumf %75, %79 : vector<8x128xf32>
    %c1_i32_47 = arith.constant 1 : i32
    %81 = arith.addi %71, %c1_i32_47 : i32
    %82 = arith.index_cast %81 : i32 to index
    %c0_48 = arith.constant 0 : index
    %c0_49 = arith.constant 0 : index
    %83 = tpu.strided_load %arg1[%82, %c0_48, %c0_49] {strides = array<i32: 1, 2, 1>} : memref<16x16x128xf32, #tpu.memory_space<vmem>>, vector<1x8x128xf32>
    %84 = vector.shape_cast %83 : vector<1x8x128xf32> to vector<8x128xf32>
    %85 = arith.maximumf %80, %84 : vector<8x128xf32>
    %c1_i32_50 = arith.constant 1 : i32
    %86 = arith.addi %71, %c1_i32_50 : i32
    %87 = arith.index_cast %86 : i32 to index
    %c1_51 = arith.constant 1 : index
    %c0_52 = arith.constant 0 : index
    %88 = tpu.strided_load %arg1[%87, %c1_51, %c0_52] {strides = array<i32: 1, 2, 1>} : memref<16x16x128xf32, #tpu.memory_space<vmem>>, vector<1x8x128xf32>
    %89 = vector.shape_cast %88 : vector<1x8x128xf32> to vector<8x128xf32>
    %90 = arith.maximumf %85, %89 : vector<8x128xf32>
    %c3 = arith.constant 3 : index
    %c0_53 = arith.constant 0 : index
    %c0_54 = arith.constant 0 : index
    %91 = vector.load %arg2[%c3, %c0_53, %c0_54] : memref<4x8x128xf32, #tpu.memory_space<vmem>>, vector<1x8x128xf32>
    %92 = vector.shape_cast %91 : vector<1x8x128xf32> to vector<8x128xf32>
    %93 = vector.shape_cast %90 : vector<8x128xf32> to vector<1x8x128xf32>
    tpu.vector_store %arg2[%c3, %c0_53, %c0_54], %93 {strides = array<i32>} : memref<4x8x128xf32, #tpu.memory_space<vmem>>, vector<1x8x128xf32>,
    return
  }
  func.func @transform_0(%arg0: i32) -> (i32, i32, i32) {
    %c0_i32 = arith.constant 0 : i32
    %c0_i32_0 = arith.constant 0 : i32
    %c0_i32_1 = arith.constant 0 : i32
    %c0_i32_2 = arith.constant 0 : i32
    return %c0_i32, %c0_i32_0, %c0_i32_1 : i32, i32, i32
  }
  func.func @transform_1(%arg0: i32) -> (i32, i32, i32) {
    %c0_i32 = arith.constant 0 : i32
    %c0_i32_0 = arith.constant 0 : i32
    %c0_i32_1 = arith.constant 0 : i32
    return %arg0, %c0_i32, %c0_i32_0 : i32, i32, i32
  }
}

</mosaic_0001>

<bundles_post_ra>
// kernel: tpu_custom_call.1
= control target key start
LH: loop header
LB: loop body
LE: loop exit
PB: predicated region body
PF: predicated region fallthrough
CT: control target
= control target key end

     0   :  { %6 = vsyncpa [#allocation3], 0  ;;  %s627_s0 = inlined_call_operand.hbm [shape: f32[16,16,128], index: 0, kind: input, shape index: {}]   ;;  %s628_s1 = inlined_call_operand.hbm [shape: f32[8,8,128], index: 1, kind: output, shape index: {}]  }
   0x1   :  { %7 = vsyncpa [#allocation4], 0 }
   0x2   :  { %9 = vsyncpa [#allocation4 + $0x1], 0  ;;  %s507_s6 = smov 0   ;;  %s509_s7 = smov 0  }
   0x3   :  { %s511_s8 = smov 0   ;;  %s513_s9 = smov 0  }
   0x4 LB: > { %s528_s10 = sadd.s32 4294967295, %s489_s9   ;;  %s291_s11 = sadd.s32 4294967294, %s489_s9   ;;  %s489_s9 = sphi %s513_s9, %s636_s9   ;;  %s485_s8 = sphi %s511_s8, %s635_s8   ;;  %s481_s7 = sphi %s509_s7, %s634_s7   ;;  %s477_s6 = sphi %s507_s6, %s633_s6  }
   0x5   : > { %s532_s12 = sadd.s32 1, %s489_s9   ;;  %s43_s13 = sadd.s32 1, %s485_s8 }
   0x6   : > { %s40_s14 = ssub.s32 %s489_s9, %s532_s12  ;;  %p53_p0 = scmp.ne.s32.totalorder %s485_s8, %s481_s7 }
   0x7   : > { %p41_p1 = scmp.eq.s32.totalorder %s40_s14, 0  ;;  %p54_p2 = scmp.eq.s32.totalorder %s528_s10, 1 }
   0x8   : > { %p59_p3 = scmp.ne.s32.totalorder %s481_s7, %s477_s6  ;;  %p60_p4 = scmp.eq.s32.totalorder %s291_s11, 1 }
   0x9   : > { %s543_s15 = scalar_select %p41_p1, %s485_s8, %s43_s13  }
   0xa   : > { %p545_p5 = por %p54_p2, %p53_p0  ;;  %p549_p6 = por %p60_p4, %p59_p3 }
   0xb   : > { %p292_p7 = scmp.ge.s32.totalorder %s489_s9, 1  ;;  %p67_p8 = scmp.lt.s32.totalorder %s489_s9, 3 }
   0xc   : > { %s630_s17 = scalar_select %p549_p6, 1, 0 }
   0xd   : > { %p359_p9 = scmp.eq.s32.totalorder %s528_s10, 0  ;;  %p556_p10 = pnand %p292_p7, %p67_p8 }
   0xe   : > { %s491_s19 = smov [#allocation2]  }
   0xf   : > { %s79_s20 = sshll.u32 %s491_s19, 4  ;;  %p351_p11 = pneg %p556_p10  ;;  %s80_s20 = int_to_ptr.vmem [resolvable:$true] %s79_s20 }
  0x10   : > { %s410_s21 = scalar_lea.vmem %s80_s20, 4096  ;;  %p418_p3 = scmp.lt.s32.totalorder %s80_s20, %s80_s20 }
  0x11   : > { %p352_p12 = pnand %p359_p9, %p351_p11  ;;  %p411_p0 = scmp.ne.s32.totalorder %s80_s20, %s410_s21 }
  0x12   : > { %p419_p4 = scmp.lt.s32.totalorder %s410_s21, %s410_s21 }
  0x13   : > { %p401_p13 = pneg %p352_p12 }
  0x14   : > { %p420_p6 = por %p419_p4, %p418_p3 }
  0x15   : > { %p413_p1 = pnand %p411_p0, %p401_p13 }
  0x17   : > { %p414_p2 = pneg %p413_p1 }
  0x19   : > { %p421_p7 = pnand %p420_p6, %p414_p2 }
  0x1b   : > { %424 = shalt.err (!%p421_p7)
}
  0x1c   : > { %s492_s22 = smov 128   ;;  %s493_s23 = smov 8  }
  0x1d   : > { %354 = dma.hbm_to_vmem [thread:$0]  (!%p352_p12), %s627_s0, 4096, %s80_s20, [#allocation3], %s492_s22, %s492_s22, %s493_s23  }
  0x1e   : > { %95 = sbr.rel (%p556_p10) target bundleno = 67 (0x43), region = 24 }
  0x23   : > { %468 = dma.done.wait (%p359_p9), [#allocation3], 4096  }
  0x24   : > { %470 = vsyncadd (%p359_p9), [#allocation3], 4294963200  ;;  %s336_s26 = sshll.u32 %s528_s10, 7  ;;  %s107_s27 = sand.u32 1, %s481_s7  }
  0x25   : > { %s296_s28 = sshll.u32 %s107_s27, 5  ;;  %s113_s29 = scalar_lea.vmem [#allocation2], %s336_s26 }
  0x26   : > { %v114_v0 = vld [vmem:[%s113_s29] ss:$2 sm:$0xff]  ;;  %v299_v1 = vld [vmem:[%s113_s29 + $0x1] ss:$2 sm:$0xff]  ;;  %v302_v2 = vld [vmem:[%s113_s29 + $0x10] ss:$2 sm:$0xff] }
  0x27   : > { %v117_v3 = vmax.f32 %v114_v0, %v299_v1  ;;  %v306_v4 = vld [vmem:[%s113_s29 + $0x20] ss:$2 sm:$0xff]  ;;  %v307_v5 = vld [vmem:[%s113_s29 + $0x21] ss:$2 sm:$0xff]  ;;  %v303_v6 = vld [vmem:[%s113_s29 + $0x11] ss:$2 sm:$0xff] }
  0x28   : > { %v133_v7 = vmax.f32 %v306_v4, %v307_v5  ;;  %v310_v8 = vld [vmem:[%s113_s29 + $0x30] ss:$2 sm:$0xff]  ;;  %v315_v9 = vld [vmem:[%s113_s29 + $0x40] ss:$2 sm:$0xff]  ;;  %v311_v11 = vld [vmem:[%s113_s29 + $0x31] ss:$2 sm:$0xff] }
  0x29   : > { %v122_v10 = vmax.f32 %v117_v3, %v302_v2  ;;  %v316_v12 = vld [vmem:[%s113_s29 + $0x41] ss:$2 sm:$0xff]  ;;  %v319_v13 = vld [vmem:[%s113_s29 + $0x50] ss:$2 sm:$0xff]  ;;  %v324_v16 = vld [vmem:[%s113_s29 + $0x60] ss:$2 sm:$0xff] }
  0x2a   : > { %v138_v14 = vmax.f32 %v133_v7, %v310_v8  ;;  %v150_v15 = vmax.f32 %v315_v9, %v316_v12  ;;  %v325_v17 = vld [vmem:[%s113_s29 + $0x61] ss:$2 sm:$0xff]  ;;  %v328_v18 = vld [vmem:[%s113_s29 + $0x70] ss:$2 sm:$0xff]  ;;  %s109_s30 = scalar_lea.vmem [#allocation5], %s296_s28  ;;  %s344_s3 = sshll.u32 %s528_s10, 9 }
  0x2b   : > { %v125_v19 = vmax.f32 %v122_v10, %v303_v6  ;;  %s192_s2 = sshll.u32 %s109_s30, 4  ;;  %v320_v20 = vld [vmem:[%s113_s29 + $0x51] ss:$2 sm:$0xff]  ;;  %v167_v21 = vmax.f32 %v324_v16, %v325_v17  ;;  %s583_s11 = scalar_lea.hbm %s628_s1, %s344_s3  ;;  %s578_s2 = int_to_ptr.vmem [resolvable:$true] %s192_s2 }
  0x2c   : > { %v141_v22 = vmax.f32 %v138_v14, %v311_v11  ;;  %v155_v23 = vmax.f32 %v150_v15, %v319_v13  ;;  %v329_v24 = vld [vmem:[%s113_s29 + $0x71] ss:$2 sm:$0xff]  ;;  %s587_s10 = scalar_lea.sflag [#allocation4], %s107_s27  ;;  %s425_s13 = scalar_lea.vmem %s578_s2, 512 }
  0x2d   : > { %126 = vst [vmem:[%s109_s30] sm:$0xff] %v125_v19  ;;  %v172_v25 = vmax.f32 %v167_v21, %v328_v18  ;;  %p426_p6 = scmp.ne.s32.totalorder %s578_s2, %s425_s13  ;;  %s494_s14 = smov [#allocation5]  }
  0x2e   : > { %312 = vst [vmem:[%s109_s30 + $0x8] sm:$0xff] %v141_v22  ;;  %v158_v26 = vmax.f32 %v155_v23, %v320_v20  ;;  %s429_s18 = sshll.u32 %s494_s14, 4  ;;  %s430_s18 = int_to_ptr.vmem [resolvable:$false] %s429_s18 }
  0x2f   : > { %v175_v27 = vmax.f32 %v172_v25, %v329_v24  ;;  %p427_p8 = pnand %p426_p6, %p545_p5  ;;  %s431_s19 = scalar_lea.vmem %s430_s18, 1024 }
  0x30   : > { %321 = vst [vmem:[%s109_s30 + $0x10] sm:$0xff] %v158_v26  ;;  %p432_p10 = scmp.lt.s32.totalorder %s578_s2, %s430_s18  ;;  %p433_p11 = scmp.lt.s32.totalorder %s431_s19, %s425_s13 }
  0x31   : > { %330 = vst [vmem:[%s109_s30 + $0x18] sm:$0xff] %v175_v27  ;;  %p428_p9 = pneg %p427_p8 }
  0x32   : > { %p434_p12 = por %p433_p11, %p432_p10 }
  0x34   : > { %p435_p13 = pnand %p434_p12, %p428_p9 }
  0x36   : > { %438 = shalt.err (!%p435_p13)
}
  0x37   : > { %s439_s20 = scalar_lea.hbm %s583_s11, 512  ;;  %s443_s23 = scalar_lea.hbm %s628_s1, 1024 }
  0x38   : > { %p440_p0 = scmp.ne.s32.totalorder %s583_s11, %s439_s20  ;;  %p444_p3 = scmp.lt.s32.totalorder %s583_s11, %s628_s1 }
  0x39   : > { %p445_p4 = scmp.lt.s32.totalorder %s443_s23, %s439_s20 }
  0x3a   : > { %p441_p1 = pnand %p440_p0, %p545_p5 }
  0x3b   : > { %p446_p7 = por %p445_p4, %p444_p3 }
  0x3c   : > { %p442_p2 = pneg %p441_p1 }
  0x3e   : > { %p447_p6 = pnand %p446_p7, %p442_p2 }
  0x40   : > { %450 = shalt.err (!%p447_p6)
}
  0x41   : > { %s495_s26 = smov 128   ;;  %s496_s27 = smov 8  }
  0x42   : > { %349 = dma.vmem_to_hbm [thread:$0]  (%p545_p5), %s578_s2, 512, %s583_s11, %s587_s10, %s495_s26, %s495_s26, %s496_s27  }
  0x43 PF: > { %p361_p8 = scmp.ge.s32.totalorder %s489_s9, 2  ;;  %s207_s28 = sand.u32 1, %s477_s6  }
  0x44   : > { %p632_p9 = scmp.ne.s32.totalorder %s630_s17, 0  ;;  %s208_s29 = scalar_lea.sflag [#allocation4], %s207_s28 }
  0x46   : > { %p356_p10 = pnand %p361_p8, %p632_p9 }
  0x48   : > { %p357_p11 = pneg %p356_p10 }
  0x4a   : > { %472 = dma.done.wait (%p357_p11), %s208_s29, 512  }
  0x4b   : > { %474 = vsyncadd (%p357_p11), %s208_s29, 4294966784  ;;  %p12_p12 = scmp.ge.s32.totalorder %s532_s12, 4   ;;  %s633_s6 = smov %s481_s7 }
  0x4c   : > { %s634_s7 = smov %s485_s8  ;;  %s635_s8 = smov %s543_s15 }
  0x4d   : > { %s636_s9 = smov %s532_s12  ;;  %14 = sbr.rel (!%p12_p12) target bundleno = 4 (0x4), region = 80 }
  0x52   :  { %213 = vsyncpa [#allocation3], 1 }
  0x53   :  { %215 = vsyncpa [#allocation3 + $0x1], 1 }
  0x54   :  { %216 = vsyncpa [#allocation4], 1 }
  0x55   :  { %218 = vsyncpa [#allocation4 + $0x1], 1 }

</bundles_post_ra>
